<compile_context>
chip_gen: v5e
topology: v5e:2x2
jax: 0.10.0
libtpu: 0.0.40
codegen_flags: <defaults>
</compile_context>

<pallas_src>
import functools
import math

import jax
import jax.numpy as jnp
from jax.experimental import pallas as pl
from jax.experimental.pallas import tpu as pltpu


def _cdiv(a, b):
    return (a + b - 1) // b


def _round_up(a, b):
    return _cdiv(a, b) * b


def _choose_tile_rows(packed_rows, lane_dim, itemsize, target_bytes=2 << 20):
    """Pick a row-tile: ~2 MiB input blocks, >=2 grid steps when possible."""
    tile = max(8, target_bytes // (lane_dim * itemsize))
    tile -= tile % 8
    if packed_rows >= 2 * tile:
        return int(tile)
    if packed_rows >= 16:
        # Split the work into (at least) two grid steps for v7x megacore.
        return int(_round_up(_cdiv(packed_rows, 2), 8))
    return int(_round_up(packed_rows, 8))


def _layernorm_rows_kernel(x_ref, g_ref, b_ref, o_ref, *, dim, eps):
    """One normalized vector per row: x_ref (tile_rows, dim)."""
    x = x_ref[...].astype(jnp.float32)
    inv_n = 1.0 / dim
    s = jnp.sum(x, axis=-1, keepdims=True)
    s2 = jnp.sum(x * x, axis=-1, keepdims=True)
    mean = s * inv_n
    var = jnp.maximum(s2 * inv_n - mean * mean, 0.0)
    inv = jax.lax.rsqrt(var + eps)
    y = (x - mean) * inv
    g = g_ref[...].astype(jnp.float32)
    b = b_ref[...].astype(jnp.float32)
    o_ref[...] = (y * g + b).astype(o_ref.dtype)


def _layernorm_packed_kernel(x_ref, g_ref, b_ref, seg_ref, o_ref, *, dim, eps):
    """pack = 128//dim logical rows per lane row: x_ref (tile_rows, 128).

    seg_ref is a (128, 128) block-diagonal ones matrix; x @ seg gives each
    lane the sum of its own segment (i.e. per-logical-row sums broadcast back),
    so the segmented reduction runs on the MXU, which is otherwise idle here.
    """
    x = x_ref[...].astype(jnp.float32)
    seg = seg_ref[...]
    s = jnp.dot(x, seg, preferred_element_type=jnp.float32,
                precision=jax.lax.Precision.HIGHEST)
    s2 = jnp.dot(x * x, seg, preferred_element_type=jnp.float32,
                 precision=jax.lax.Precision.HIGHEST)
    inv_n = 1.0 / dim
    mean = s * inv_n
    var = jnp.maximum(s2 * inv_n - mean * mean, 0.0)
    inv = jax.lax.rsqrt(var + eps)
    y = (x - mean) * inv
    g = g_ref[...].astype(jnp.float32)
    b = b_ref[...].astype(jnp.float32)
    o_ref[...] = (y * g + b).astype(o_ref.dtype)


def layer_norm(x, gamma, beta, *, eps=1e-5, tile_rows=None):
    """LayerNorm over the last axis of x (any rank >= 1)."""
    orig_shape = x.shape
    dim = int(orig_shape[-1])
    rows = math.prod(orig_shape[:-1]) if len(orig_shape) > 1 else 1
    itemsize = jnp.dtype(x.dtype).itemsize

    # Lane-dense packing for small dims (dim | 128).  Otherwise the last axis
    # is presented as-is (lane-dense when dim % 128 == 0; for other dims the
    # full-extent last dim is a correct but not lane-dense fallback).
    use_packed = dim < 128 and (128 % dim == 0)
    pack = 128 // dim if use_packed else 1
    lane_dim = dim * pack

    packed_rows = _cdiv(rows, pack)
    if tile_rows is None:
        tile_rows = _choose_tile_rows(packed_rows, lane_dim, itemsize)
    padded_packed = _round_up(packed_rows, tile_rows)
    padded_rows = padded_packed * pack
    grid = (padded_packed // tile_rows,)

    x2d = x.reshape(rows, dim)
    if padded_rows != rows:
        x2d = jnp.pad(x2d, ((0, padded_rows - rows), (0, 0)))
    x2d = x2d.reshape(padded_packed, lane_dim)

    g2d = jnp.tile(gamma.reshape(1, dim), (1, pack))
    b2d = jnp.tile(beta.reshape(1, dim), (1, pack))

    inputs = [x2d, g2d, b2d]
    in_specs = [
        pl.BlockSpec((tile_rows, lane_dim), lambda i: (i, 0)),
        pl.BlockSpec((1, lane_dim), lambda i: (0, 0)),
        pl.BlockSpec((1, lane_dim), lambda i: (0, 0)),
    ]
    if use_packed:
        seg_ids = jnp.arange(lane_dim, dtype=jnp.int32) // dim
        seg_mat = (seg_ids[:, None] == seg_ids[None, :]).astype(jnp.float32)
        inputs.append(seg_mat)
        in_specs.append(pl.BlockSpec((lane_dim, lane_dim), lambda i: (0, 0)))
        kernel = functools.partial(_layernorm_packed_kernel, dim=dim, eps=eps)
    else:
        kernel = functools.partial(_layernorm_rows_kernel, dim=dim, eps=eps)

    out = pl.pallas_call(
        kernel,
        out_shape=jax.ShapeDtypeStruct((padded_packed, lane_dim), x.dtype),
        grid_spec=pltpu.PrefetchScalarGridSpec(
            num_scalar_prefetch=0,
            grid=grid,
            in_specs=in_specs,
            out_specs=pl.BlockSpec((tile_rows, lane_dim), lambda i: (i, 0)),
        ),
        compiler_params=pltpu.CompilerParams(
            dimension_semantics=("parallel",),
            # ~2 MiB in + 2 MiB out, double-buffered, stays well inside this
            # on every generation (raised above the v5e 16 MiB scoped default).
            vmem_limit_bytes=32 * 1024 * 1024,
        ),
    )(*inputs)

    out = out.reshape(padded_rows, dim)
    if padded_rows != rows:
        out = out[:rows]
    return out.reshape(orig_shape)


def _reference(x, gamma, beta, eps=1e-5):
    mean = jnp.mean(x, axis=-1, keepdims=True)
    var = jnp.mean((x - mean) ** 2, axis=-1, keepdims=True)
    return (x - mean) / jnp.sqrt(var + eps) * gamma + beta


if __name__ == "__main__":
    key = jax.random.PRNGKey(0)

    # Module-consistent small shapes: dim=32 (packed lane-dense path).
    batch, seq, dim = 2, 8, 32
    gamma = jnp.ones((dim,), dtype=jnp.float32)   # nn.Parameter(torch.ones(dim))
    beta = jnp.zeros((dim,), dtype=jnp.float32)   # register_buffer('beta', zeros)
    x = jax.random.normal(key, (batch, seq, dim), dtype=jnp.float32)

    y = jax.block_until_ready(layer_norm(x, gamma, beta))
    ref = _reference(x, gamma, beta)
    assert y.shape == x.shape and y.dtype == x.dtype
    assert float(jnp.max(jnp.abs(y - ref))) < 2e-5

    # Also exercise the per-row (dim % 128 == 0) path with a multi-step grid.
    dim2 = 256
    g2 = jnp.ones((dim2,), dtype=jnp.float32)
    b2 = jnp.zeros((dim2,), dtype=jnp.float32)
    x2 = jax.random.normal(jax.random.PRNGKey(1), (4, 16, dim2), dtype=jnp.float32)
    y2 = jax.block_until_ready(layer_norm(x2, g2, b2))
    assert float(jnp.max(jnp.abs(y2 - _reference(x2, g2, b2)))) < 1e-4

    print("KERNEL_OK")
</pallas_src>

<mosaic_0001>
module attributes {stable_mosaic.version = 11 : i64} {
  func.func @_layernorm_packed_kernel(%arg0: i32, %arg1: memref<8x128xf32, #tpu.memory_space<vmem>>, %arg2: memref<1x128xf32, #tpu.memory_space<vmem>>, %arg3: memref<1x128xf32, #tpu.memory_space<vmem>>, %arg4: memref<128x128xf32, #tpu.memory_space<vmem>>, %arg5: memref<8x128xf32, #tpu.memory_space<vmem>>) attributes {dimension_semantics = [#tpu.dimension_semantics<parallel>], iteration_bounds = array<i64: 1>, scalar_prefetch = 0 : i64, scratch_operands = 0 : i64, tpu.core_type = #tpu.core_type<tc>, window_params = [{transform_indices = @transform_0, window_bounds = array<i64: 8, 128>}, {pipeline_mode = #tpu.pipeline_mode<synchronous>, transform_indices = @transform_1, window_bounds = array<i64: 1, 128>}, {pipeline_mode = #tpu.pipeline_mode<synchronous>, transform_indices = @transform_2, window_bounds = array<i64: 1, 128>}, {pipeline_mode = #tpu.pipeline_mode<synchronous>, transform_indices = @transform_3, window_bounds = array<i64: 128, 128>}, {transform_indices = @transform_4, window_bounds = array<i64: 8, 128>}]} {
    %c0 = arith.constant 0 : index
    %c0_0 = arith.constant 0 : index
    %0 = vector.load %arg1[%c0, %c0_0] : memref<8x128xf32, #tpu.memory_space<vmem>>, vector<8x128xf32>
    %c0_1 = arith.constant 0 : index
    %c0_2 = arith.constant 0 : index
    %1 = vector.load %arg4[%c0_1, %c0_2] : memref<128x128xf32, #tpu.memory_space<vmem>>, vector<128x128xf32>
    %cst = arith.constant dense<0.000000e+00> : vector<8x128xf32>
    %2 = tpu.matmul %0, %1, %cst {dimension_numbers = #tpu.dot_dimension_numbers<[1], [0], [0], [1], [0, 0, 1, 1], [], []>, precision = #tpu.contract_precision<fp32>} : vector<8x128xf32>, vector<128x128xf32>, vector<8x128xf32> -> vector<8x128xf32>
    %3 = arith.mulf %0, %0 : vector<8x128xf32>
    %cst_3 = arith.constant dense<0.000000e+00> : vector<8x128xf32>
    %4 = tpu.matmul %3, %1, %cst_3 {dimension_numbers = #tpu.dot_dimension_numbers<[1], [0], [0], [1], [0, 0, 1, 1], [], []>, precision = #tpu.contract_precision<fp32>} : vector<8x128xf32>, vector<128x128xf32>, vector<8x128xf32> -> vector<8x128xf32>
    %cst_4 = arith.constant 3.125000e-02 : f32
    %5 = vector.broadcast %cst_4 : f32 to vector<8x128xf32>
    %6 = arith.mulf %2, %5 : vector<8x128xf32>
    %cst_5 = arith.constant 3.125000e-02 : f32
    %7 = vector.broadcast %cst_5 : f32 to vector<8x128xf32>
    %8 = arith.mulf %4, %7 : vector<8x128xf32>
    %9 = arith.mulf %6, %6 : vector<8x128xf32>
    %10 = arith.subf %8, %9 : vector<8x128xf32>
    %cst_6 = arith.constant 0.000000e+00 : f32
    %11 = vector.broadcast %cst_6 : f32 to vector<8x128xf32>
    %12 = arith.maximumf %10, %11 : vector<8x128xf32>
    %cst_7 = arith.constant 9.99999974E-6 : f32
    %13 = vector.broadcast %cst_7 : f32 to vector<8x128xf32>
    %14 = arith.addf %12, %13 : vector<8x128xf32>
    %15 = math.rsqrt %14 : vector<8x128xf32>
    %16 = arith.subf %0, %6 : vector<8x128xf32>
    %17 = arith.mulf %16, %15 : vector<8x128xf32>
    %c0_8 = arith.constant 0 : index
    %c0_9 = arith.constant 0 : index
    %18 = vector.load %arg2[%c0_8, %c0_9] : memref<1x128xf32, #tpu.memory_space<vmem>>, vector<1x128xf32>
    %c0_10 = arith.constant 0 : index
    %c0_11 = arith.constant 0 : index
    %19 = vector.load %arg3[%c0_10, %c0_11] : memref<1x128xf32, #tpu.memory_space<vmem>>, vector<1x128xf32>
    %20 = vector.broadcast %18 : vector<1x128xf32> to vector<8x128xf32>
    %21 = arith.mulf %17, %20 : vector<8x128xf32>
    %22 = vector.broadcast %19 : vector<1x128xf32> to vector<8x128xf32>
    %23 = arith.addf %21, %22 : vector<8x128xf32>
    %c0_12 = arith.constant 0 : index
    %c0_13 = arith.constant 0 : index
    %24 = vector.load %arg5[%c0_12, %c0_13] : memref<8x128xf32, #tpu.memory_space<vmem>>, vector<8x128xf32>
    tpu.vector_store %arg5[%c0_12, %c0_13], %23 {strides = array<i32>} : memref<8x128xf32, #tpu.memory_space<vmem>>, vector<8x128xf32>,
    return
  }
  func.func @transform_0(%arg0: i32) -> (i32, i32) {
    %c0_i32 = arith.constant 0 : i32
    %c0_i32_0 = arith.constant 0 : i32
    return %arg0, %c0_i32 : i32, i32
  }
  func.func @transform_1(%arg0: i32) -> (i32, i32) {
    %c0_i32 = arith.constant 0 : i32
    %c0_i32_0 = arith.constant 0 : i32
    %c0_i32_1 = arith.constant 0 : i32
    return %c0_i32, %c0_i32_0 : i32, i32
  }
  func.func @transform_2(%arg0: i32) -> (i32, i32) {
    %c0_i32 = arith.constant 0 : i32
    %c0_i32_0 = arith.constant 0 : i32
    %c0_i32_1 = arith.constant 0 : i32
    return %c0_i32, %c0_i32_0 : i32, i32
  }
  func.func @transform_3(%arg0: i32) -> (i32, i32) {
    %c0_i32 = arith.constant 0 : i32
    %c0_i32_0 = arith.constant 0 : i32
    %c0_i32_1 = arith.constant 0 : i32
    return %c0_i32, %c0_i32_0 : i32, i32
  }
  func.func @transform_4(%arg0: i32) -> (i32, i32) {
    %c0_i32 = arith.constant 0 : i32
    %c0_i32_0 = arith.constant 0 : i32
    return %arg0, %c0_i32 : i32, i32
  }
}

</mosaic_0001>

<bundles_post_ra>
// kernel: tpu_custom_call.1
= control target key start
LH: loop header
LB: loop body
LE: loop exit
PB: predicated region body
PF: predicated region fallthrough
CT: control target
= control target key end

     0   :  { %9 = vsyncpa [#allocation3], 0  ;;  %s1369_s0 = inlined_call_operand.hbm [shape: f32[8,128], index: 0, kind: input, shape index: {}]   ;;  %s1370_s1 = inlined_call_operand.hbm [shape: f32[1,128], index: 1, kind: input, shape index: {}]   ;;  %s1371_s2 = inlined_call_operand.vmem [shape: f32[1,128], index: 2, kind: input, shape index: {}]   ;;  %s1372_s3 = inlined_call_operand.hbm [shape: f32[128,128], index: 3, kind: input, shape index: {}]   ;;  %s1373_s4 = inlined_call_operand.hbm [shape: f32[8,128], index: 4, kind: output, shape index: {}]  }
   0x1   :  { %10 = vsyncpa [#allocation6], 0  ;;  %s28_s17 = sshll.u32 %s1370_s1, 4  ;;  %s29_s17 = int_to_ptr.hbm [resolvable:$true] %s28_s17 }
   0x2   :  { %11 = vsyncpa [#allocation4], 0  ;;  %s920_s18 = smov [#allocation5]   ;;  %s17_s22 = sshll.u32 %s1369_s0, 4  ;;  %s18_s22 = int_to_ptr.hbm [resolvable:$true] %s17_s22 }
   0x3   :  { %s30_s19 = sshll.u32 %s920_s18, 4  ;;  %s921_s23 = smov [#allocation2]   ;;  %s31_s19 = int_to_ptr.vmem [resolvable:$true] %s30_s19 }
   0x4   :  { %33 = dma.hbm_to_vmem [thread:$0]  %s29_s17, 16, %s31_s19, [#allocation6]  }
   0x5   :  { %s19_s24 = sshll.u32 %s921_s23, 4  ;;  %s40_s27 = sshll.u32 %s1372_s3, 4  ;;  %s20_s24 = int_to_ptr.vmem [resolvable:$true] %s19_s24  ;;  %s41_s27 = int_to_ptr.hbm [resolvable:$true] %s40_s27 }
   0x6   :  { %22 = dma.hbm_to_vmem [thread:$0]  %s18_s22, 128, %s20_s24, [#allocation3]  }
   0x7   :  { %s922_s1 = smov [#allocation7]   ;;  %s923_s29 = smov 128  }
   0x8   :  { %s42_s28 = sshll.u32 %s922_s1, 4  ;;  %s924_s30 = smov 8   ;;  %s43_s28 = int_to_ptr.vmem [resolvable:$true] %s42_s28 }
   0x9   :  { %48 = dma.hbm_to_vmem [thread:$0]  %s41_s27, 2048, %s43_s28, [#allocation6], %s923_s29, %s923_s29, %s924_s30  }
   0xa   :  { %914 = dma.done.wait [#allocation3], 128  }
   0xb   :  { %915 = vsyncadd [#allocation3], 4294967168 }
   0xc   :  { %916 = dma.done.wait [#allocation6], 2064  }
   0xd   :  { %917 = vsyncadd [#allocation6], 4294965232  ;;  %v77_v0 = vld [vmem:[#allocation7 + $0x78] sm:$0xff]  ;;  %v76_v1 = vld [vmem:[#allocation7 + $0x70] sm:$0xff]  ;;  %s925_s5 = smov [#allocation8]   ;;  %s797_s9 = sshll.u32 %s1373_s4, 4  ;;  %s798_s9 = int_to_ptr.hbm [resolvable:$true] %s797_s9 }
   0xe   :  { %v75_v2 = vld [vmem:[#allocation7 + $0x68] sm:$0xff]  ;;  %v960_v3 = vand.u32 4294901760, %v77_v0  ;;  %v962_v4 = vand.u32 4294901760, %v76_v1  ;;  %v74_v6 = vld [vmem:[#allocation7 + $0x60] sm:$0xff]  ;;  %v73_v7 = vld [vmem:[#allocation7 + $0x58] sm:$0xff]  ;;  %s795_s6 = sshll.u32 %s925_s5, 4  ;;  %s796_s6 = int_to_ptr.vmem [resolvable:$true] %s795_s6 }
   0xf   :  { %v964_v5 = vand.u32 4294901760, %v75_v2  ;;  %v72_v8 = vld [vmem:[#allocation7 + $0x50] sm:$0xff]  ;;  %v966_v9 = vand.u32 4294901760, %v74_v6  ;;  %v968_v10 = vand.u32 4294901760, %v73_v7  ;;  %v71_v12 = vld [vmem:[#allocation7 + $0x48] sm:$0xff]  ;;  %v70_v13 = vld [vmem:[#allocation7 + $0x40] sm:$0xff] }
  0x10   :  { %v970_v11 = vand.u32 4294901760, %v72_v8  ;;  %79 = vmatpush.msra.mxu0 %v960_v3  ;;  %v974_v14 = vsub.f32 %v77_v0, %v960_v3  ;;  %v977_v15 = vsub.f32 %v76_v1, %v962_v4  ;;  %275 = vmatpush.msra.mxu3 %v960_v3  ;;  %v983_v17 = vand.u32 4294901760, %v71_v12  ;;  %v69_v21 = vld [vmem:[#allocation7 + $0x38] sm:$0xff]  ;;  %v68_v34 = vld [vmem:[#allocation7 + $0x30] sm:$0xff]  ;;  %v67_v35 = vld [vmem:[#allocation7 + $0x28] sm:$0xff] }
  0x11   :  { %v981_v16 = vsub.f32 %v75_v2, %v964_v5  ;;  %v986_v18 = vsub.f32 %v74_v6, %v966_v9  ;;  %v989_v19 = vsub.f32 %v73_v7, %v968_v10  ;;  %v1005_v25 = vand.u32 4294901760, %v70_v13  ;;  %v66_v42 = vld [vmem:[#allocation7 + $0x20] sm:$0xff]  ;;  %v65_v48 = vld [vmem:[#allocation7 + $0x18] sm:$0xff]  ;;  %v64_v54 = vld [vmem:[#allocation7 + $0x10] sm:$0xff] }
  0x12   :  { %v992_v20 = vsub.f32 %v72_v8, %v970_v11  ;;  %222 = vmatpush.msra.mxu2 %v974_v14  ;;  %81 = vmatpush.msra.mxu0 %v962_v4  ;;  %v997_v22 = vand.u32 4294901760, %v974_v14  ;;  %v1000_v23 = vand.u32 4294901760, %v977_v15  ;;  %v1015_v28 = vsub.f32 %v71_v12, %v983_v17  ;;  %v63_v60 = vld [vmem:[#allocation7 + $0x8] sm:$0xff]  ;;  %v62_v1 = vld [vmem:[#allocation7] sm:$0xff] }
  0x13   :  { %v1003_v24 = vand.u32 4294901760, %v981_v16  ;;  %277 = vmatpush.msra.mxu3 %v962_v4  ;;  %v1009_v26 = vand.u32 4294901760, %v986_v18  ;;  %v1012_v27 = vand.u32 4294901760, %v989_v19  ;;  %v1025_v32 = vand.u32 4294901760, %v69_v21 }
  0x14   :  { %225 = vmatpush.msra.mxu2 %v977_v15  ;;  %83 = vmatpush.msra.mxu0 %v964_v5  ;;  %v122_v29 = vsub.f32 %v974_v14, %v997_v22  ;;  %v128_v30 = vsub.f32 %v977_v15, %v1000_v23  ;;  %v1029_v33 = vand.u32 4294901760, %v992_v20  ;;  %v1040_v39 = vsub.f32 %v70_v13, %v1005_v25 }
  0x15   :  { %v134_v31 = vsub.f32 %v981_v16, %v1003_v24  ;;  %279 = vmatpush.msra.mxu3 %v964_v5  ;;  %v140_v38 = vsub.f32 %v986_v18, %v1009_v26  ;;  %v146_v40 = vsub.f32 %v989_v19, %v1012_v27  ;;  %v1046_v41 = vand.u32 4294901760, %v1015_v28 }
  0x16   :  { %v1031_v36 = vand.u32 4294901760, %v122_v29  ;;  %228 = vmatpush.msra.mxu2 %v981_v16  ;;  %85 = vmatpush.msra.mxu0 %v966_v9  ;;  %v1035_v37 = vand.u32 4294901760, %v128_v30  ;;  %v1053_v44 = vsub.f32 %v69_v21, %v1025_v32  ;;  %v1055_v45 = vand.u32 4294901760, %v68_v34 }
  0x17   :  { %281 = vmatpush.msra.mxu3 %v966_v9  ;;  %v1050_v43 = vand.u32 4294901760, %v134_v31  ;;  %v1057_v46 = vand.u32 4294901760, %v67_v35  ;;  %v152_v47 = vsub.f32 %v992_v20, %v1029_v33  ;;  %v1065_v49 = vand.u32 4294901760, %v140_v38 }
  0x18   :  { %124 = vmatpush.msra.mxu1 %v1031_v36  ;;  %231 = vmatpush.msra.mxu2 %v986_v18  ;;  %v1068_v50 = vand.u32 4294901760, %v1040_v39  ;;  %v1071_v51 = vsub.f32 %v68_v34, %v1055_v45  ;;  %v1073_v52 = vand.u32 4294901760, %v66_v42  ;;  %v158_v53 = vsub.f32 %v1015_v28, %v1046_v41 }
  0x19   :  { %87 = vmatpush.msra.mxu0 %v968_v10  ;;  %283 = vmatpush.msra.mxu3 %v968_v10  ;;  %v1081_v55 = vand.u32 4294901760, %v146_v40  ;;  %v1084_v56 = vand.u32 4294901760, %v1053_v44  ;;  %v1087_v57 = vsub.f32 %v67_v35, %v1057_v46  ;;  %v1089_v58 = vand.u32 4294901760, %v65_v48 }
  0x1a   :  { %130 = vmatpush.msra.mxu1 %v1035_v37  ;;  %234 = vmatpush.msra.mxu2 %v989_v19  ;;  %v1092_v59 = vand.u32 4294901760, %v152_v47  ;;  %v164_v61 = vsub.f32 %v1040_v39, %v1068_v50  ;;  %v1100_v62 = vand.u32 4294901760, %v1071_v51  ;;  %v1103_v63 = vsub.f32 %v66_v42, %v1073_v52 }
  0x1b   :  { %89 = vmatpush.msra.mxu0 %v970_v11  ;;  %285 = vmatpush.msra.mxu3 %v970_v11  ;;  %v1105_v0 = vand.u32 4294901760, %v64_v54  ;;  %v1108_v2 = vand.u32 4294901760, %v158_v53  ;;  %v170_v6 = vsub.f32 %v1053_v44, %v1084_v56  ;;  %v1116_v7 = vand.u32 4294901760, %v1087_v57 }
  0x1c   :  { %136 = vmatpush.msra.mxu1 %v1050_v43  ;;  %237 = vmatpush.msra.mxu2 %v992_v20  ;;  %1376 = vst [vmem:[#allocation12_spill] sm:$0xff] %v1103_v63  ;;  %v1119_v8 = vsub.f32 %v65_v48, %v1089_v58  ;;  %v1121_v12 = vand.u32 4294901760, %v63_v60  ;;  %v1125_v13 = vand.u32 4294901760, %v62_v1  ;;  %v1129_v21 = vand.u32 4294901760, %v164_v61 }
  0x1d   :  { %91 = vmatpush.msra.mxu0 %v983_v17  ;;  %287 = vmatpush.msra.mxu3 %v983_v17  ;;  %v176_v29 = vsub.f32 %v1071_v51, %v1100_v62  ;;  %v1134_v30 = vand.u32 4294901760, %v1103_v63  ;;  %v1137_v31 = vsub.f32 %v64_v54, %v1105_v0  ;;  %v1143_v34 = vand.u32 4294901760, %v170_v6 }
  0x1e   :  { %142 = vmatpush.msra.mxu1 %v1065_v49  ;;  %240 = vmatpush.msra.mxu2 %v1015_v28  ;;  %1377 = vst [vmem:[#allocation13_spill] sm:$0xff] %v1119_v8  ;;  %v182_v35 = vsub.f32 %v1087_v57, %v1116_v7  ;;  %v1148_v38 = vand.u32 4294901760, %v1119_v8  ;;  %v1151_v40 = vsub.f32 %v63_v60, %v1121_v12 }
  0x1f   :  { %93 = vmatpush.msra.mxu0 %v1005_v25  ;;  %289 = vmatpush.msra.mxu3 %v1005_v25  ;;  %v1157_v42 = vand.u32 4294901760, %v176_v29  ;;  %v188_v47 = vsub.f32 %v1103_v63, %v1134_v30  ;;  %v1162_v48 = vand.u32 4294901760, %v1137_v31  ;;  %v1165_v53 = vsub.f32 %v62_v1, %v1125_v13 }
  0x20   :  { %148 = vmatpush.msra.mxu1 %v1081_v55  ;;  %243 = vmatpush.msra.mxu2 %v1040_v39  ;;  %v1171_v54 = vand.u32 4294901760, %v182_v35  ;;  %v194_v60 = vsub.f32 %v1119_v8, %v1148_v38  ;;  %v1176_v61 = vand.u32 4294901760, %v1151_v40 }
  0x21   :  { %95 = vmatpush.msra.mxu0 %v1025_v32  ;;  %291 = vmatpush.msra.mxu3 %v1025_v32  ;;  %v1182_v1 = vand.u32 4294901760, %v188_v47  ;;  %v200_v6 = vsub.f32 %v1137_v31, %v1162_v48  ;;  %v1187_v29 = vand.u32 4294901760, %v1165_v53 }
  0x22   :  { %154 = vmatpush.msra.mxu1 %v1092_v59  ;;  %246 = vmatpush.msra.mxu2 %v1053_v44  ;;  %v1193_v35 = vand.u32 4294901760, %v194_v60  ;;  %v206_v47 = vsub.f32 %v1151_v40, %v1176_v61 }
  0x23   :  { %97 = vmatpush.msra.mxu0 %v1055_v45  ;;  %293 = vmatpush.msra.mxu3 %v1055_v45 }
  0x24   :  { %160 = vmatpush.msra.mxu1 %v1108_v2  ;;  %249 = vmatpush.msra.mxu2 %v1071_v51  ;;  %v1209_v60 = vand.u32 4294901760, %v206_v47 }
  0x25   :  { %99 = vmatpush.msra.mxu0 %v1057_v46  ;;  %295 = vmatpush.msra.mxu3 %v1057_v46 }
  0x26   :  { %166 = vmatpush.msra.mxu1 %v1129_v21  ;;  %252 = vmatpush.msra.mxu2 %v1087_v57 }
  0x27   :  { %101 = vmatpush.msra.mxu0 %v1073_v52  ;;  %297 = vmatpush.msra.mxu3 %v1073_v52 }
  0x28   :  { %172 = vmatpush.msra.mxu1 %v1143_v34  ;;  %255 = vmatpush.msra.mxu2 %v1103_v63  ;;  %v212_v63 = vsub.f32 %v1165_v53, %v1187_v29 }
  0x29   :  { %103 = vmatpush.msra.mxu0 %v1089_v58  ;;  %299 = vmatpush.msra.mxu3 %v1089_v58 }
  0x2a   :  { %178 = vmatpush.msra.mxu1 %v1157_v42  ;;  %258 = vmatpush.msra.mxu2 %v1119_v8  ;;  %v1201_v8 = vand.u32 4294901760, %v200_v6  ;;  %v1215_v6 = vand.u32 4294901760, %v212_v63 }
  0x2b   :  { %105 = vmatpush.msra.mxu0 %v1105_v0  ;;  %301 = vmatpush.msra.mxu3 %v1105_v0 }
  0x2c   :  { %184 = vmatpush.msra.mxu1 %v1171_v54  ;;  %261 = vmatpush.msra.mxu2 %v1137_v31 }
  0x2d   :  { %107 = vmatpush.msra.mxu0 %v1121_v12  ;;  %303 = vmatpush.msra.mxu3 %v1121_v12 }
  0x2e   :  { %190 = vmatpush.msra.mxu1 %v1182_v1  ;;  %264 = vmatpush.msra.mxu2 %v1151_v40 }
  0x2f   :  { %109 = vmatpush.msra.mxu0 %v1125_v13  ;;  %305 = vmatpush.msra.mxu3 %v1125_v13 }
  0x30   :  { %196 = vmatpush.msra.mxu1 %v1193_v35  ;;  %267 = vmatpush.msra.mxu2 %v1165_v53 }
  0x31   :  { %316 = vmatpush.msrb.mxu0 %v997_v22  ;;  %466 = vmatpush.msrb.mxu3 %v1031_v36  ;;  %v1233_v36 = vld [vmem:[#allocation2] sm:$0xff] }
  0x32   :  { %421 = vmatpush.msrb.mxu2 %v960_v3  ;;  %202 = vmatpush.msra.mxu1 %v1201_v8  ;;  %v419_v63 = vmul.f32 %v1233_v36, %v1233_v36 }
  0x33   :  { %320 = vmatpush.msrb.mxu0 %v1000_v23  ;;  %472 = vmatpush.msrb.mxu3 %v1035_v37  ;;  %v1242_v37 = vand.u32 4294901760, %v1233_v36 }
  0x34   :  { %423 = vmatpush.msrb.mxu2 %v962_v4  ;;  %208 = vmatpush.msra.mxu1 %v1209_v60 }
  0x35   :  { %324 = vmatpush.msrb.mxu0 %v1003_v24  ;;  %478 = vmatpush.msrb.mxu3 %v1050_v43  ;;  %v111_v43 = vsub.f32 %v1233_v36, %v1242_v37 }
  0x36   :  { %425 = vmatpush.msrb.mxu2 %v964_v5  ;;  %214 = vmatpush.msra.mxu1 %v1215_v6 }
  0x37   :  { %328 = vmatpush.msrb.mxu0 %v1009_v26  ;;  %484 = vmatpush.msrb.mxu3 %v1065_v49  ;;  %v112_v49 = vand.u32 4294901760, %v111_v43 }
  0x38   :  { %383 = vmatpush.msrb.mxu1 %v960_v3  ;;  %427 = vmatpush.msrb.mxu2 %v966_v9 }
  0x39   :  { %332 = vmatpush.msrb.mxu0 %v1012_v27  ;;  %490 = vmatpush.msrb.mxu3 %v1081_v55  ;;  %v113_v55 = vsub.f32 %v111_v43, %v112_v49 }
  0x3a   :  { %385 = vmatpush.msrb.mxu1 %v962_v4  ;;  %429 = vmatpush.msrb.mxu2 %v968_v10 }
  0x3b   :  { %336 = vmatpush.msrb.mxu0 %v1029_v33  ;;  %496 = vmatpush.msrb.mxu3 %v1092_v59  ;;  %v114_v59 = vand.u32 4294901760, %v113_v55 }
  0x3c   :  { %387 = vmatpush.msrb.mxu1 %v964_v5  ;;  %431 = vmatpush.msrb.mxu2 %v970_v11 }
  0x3d   :  { %340 = vmatpush.msrb.mxu0 %v1046_v41  ;;  %502 = vmatpush.msrb.mxu3 %v1108_v2 }
  0x3e   :  { %389 = vmatpush.msrb.mxu1 %v966_v9  ;;  %433 = vmatpush.msrb.mxu2 %v983_v17 }
  0x3f   :  { %344 = vmatpush.msrb.mxu0 %v1068_v50  ;;  %508 = vmatpush.msrb.mxu3 %v1129_v21 }
  0x40   :  { %391 = vmatpush.msrb.mxu1 %v968_v10  ;;  %435 = vmatpush.msrb.mxu2 %v1005_v25 }
  0x41   :  { %348 = vmatpush.msrb.mxu0 %v1084_v56  ;;  %514 = vmatpush.msrb.mxu3 %v1143_v34 }
  0x42   :  { %393 = vmatpush.msrb.mxu1 %v970_v11  ;;  %437 = vmatpush.msrb.mxu2 %v1025_v32 }
  0x43   :  { %352 = vmatpush.msrb.mxu0 %v1100_v62  ;;  %520 = vmatpush.msrb.mxu3 %v1157_v42 }
  0x44   :  { %395 = vmatpush.msrb.mxu1 %v983_v17  ;;  %439 = vmatpush.msrb.mxu2 %v1055_v45 }
  0x45   :  { %356 = vmatpush.msrb.mxu0 %v1116_v7  ;;  %526 = vmatpush.msrb.mxu3 %v1171_v54 }
  0x46   :  { %397 = vmatpush.msrb.mxu1 %v1005_v25  ;;  %441 = vmatpush.msrb.mxu2 %v1057_v46 }
  0x47   :  { %360 = vmatpush.msrb.mxu0 %v1134_v30  ;;  %532 = vmatpush.msrb.mxu3 %v1182_v1 }
  0x48   :  { %399 = vmatpush.msrb.mxu1 %v1025_v32  ;;  %443 = vmatpush.msrb.mxu2 %v1073_v52 }
  0x49   :  { %364 = vmatpush.msrb.mxu0 %v1148_v38  ;;  %538 = vmatpush.msrb.mxu3 %v1193_v35 }
  0x4a   :  { %401 = vmatpush.msrb.mxu1 %v1055_v45  ;;  %445 = vmatpush.msrb.mxu2 %v1089_v58 }
  0x4b   :  { %368 = vmatpush.msrb.mxu0 %v1162_v48  ;;  %544 = vmatpush.msrb.mxu3 %v1201_v8 }
  0x4c   :  { %403 = vmatpush.msrb.mxu1 %v1057_v46  ;;  %447 = vmatpush.msrb.mxu2 %v1105_v0 }
  0x4d   :  { %372 = vmatpush.msrb.mxu0 %v1176_v61  ;;  %550 = vmatpush.msrb.mxu3 %v1209_v60 }
  0x4e   :  { %405 = vmatpush.msrb.mxu1 %v1073_v52  ;;  %449 = vmatpush.msrb.mxu2 %v1121_v12 }
  0x4f   :  { %270 = vmatmul.f32.vlgmr.msra.gmra.mxu2 %v111_v43  ;;  %376 = vmatpush.msrb.mxu0 %v1187_v29 }
  0x50   :  { %407 = vmatpush.msrb.mxu1 %v1089_v58  ;;  %451 = vmatpush.msrb.mxu2 %v1125_v13 }
  0x51   :  { %115 = vmatmul.f32.vlgmr.msra.gmra.mxu0 %v114_v59  ;;  %309 = vmatmul.f32.vlgmr.msra.gmra.mxu3 %v112_v49 }
  0x52   :  { %409 = vmatpush.msrb.mxu1 %v1105_v0  ;;  %564 = vmatpush.msra.mxu0 %v974_v14  ;;  %v1299_v14 = vand.u32 4294901760, %v419_v63 }
  0x53   :  { %658 = vmatpush.msra.mxu2 %v997_v22  ;;  %556 = vmatpush.msrb.mxu3 %v1215_v6 }
  0x54   :  { %411 = vmatpush.msrb.mxu1 %v1121_v12  ;;  %567 = vmatpush.msra.mxu0 %v977_v15 }
  0x55   :  { %216 = vmatmul.f32.vlgmr.msra.gmra.mxu1 %v1242_v37  ;;  %662 = vmatpush.msra.mxu2 %v1000_v23 }
  0x56   :  { %725 = vmatpush.msra.mxu3 %v960_v3  ;;  %413 = vmatpush.msrb.mxu1 %v1125_v13 }
  0x57   :  { %570 = vmatpush.msra.mxu0 %v981_v16  ;;  %666 = vmatpush.msra.mxu2 %v1003_v24 }
  0x58   :  { %617 = vmatpush.msra.mxu1 %v960_v3  ;;  %727 = vmatpush.msra.mxu3 %v962_v4  ;;  %v453_v3 = vsub.f32 %v419_v63, %v1299_v14 }
  0x59   :  { %573 = vmatpush.msra.mxu0 %v986_v18  ;;  %670 = vmatpush.msra.mxu2 %v1009_v26 }
  0x5a   :  { %619 = vmatpush.msra.mxu1 %v962_v4  ;;  %729 = vmatpush.msra.mxu3 %v964_v5  ;;  %v454_v4 = vand.u32 4294901760, %v453_v3 }
  0x5b   :  { %378 = vmatmul.f32.vlgmr.msrb.gmra.mxu0 %v1242_v37  ;;  %674 = vmatpush.msra.mxu2 %v1012_v27 }
  0x5c   :  { %621 = vmatpush.msra.mxu1 %v964_v5  ;;  %576 = vmatpush.msra.mxu0 %v989_v19  ;;  %v455_v5 = vsub.f32 %v453_v3, %v454_v4 }
  0x5d   :  { %731 = vmatpush.msra.mxu3 %v966_v9  ;;  %415 = vmatmul.f32.vlgmr.msrb.gmra.mxu1 %v1242_v37 }
  0x5e   :  { %579 = vmatpush.msra.mxu0 %v992_v20  ;;  %623 = vmatpush.msra.mxu1 %v966_v9  ;;  %v456_v9 = vand.u32 4294901760, %v455_v5 }
  0x5f   :  { %678 = vmatpush.msra.mxu2 %v1029_v33  ;;  %733 = vmatpush.msra.mxu3 %v968_v10 }
  0x60   :  { %582 = vmatpush.msra.mxu0 %v1015_v28  ;;  %625 = vmatpush.msra.mxu1 %v968_v10  ;;  %v1378_v10 = vld [vmem:[#allocation12_spill] sm:$0xff] }
  0x61   :  { %682 = vmatpush.msra.mxu2 %v1046_v41  ;;  %735 = vmatpush.msra.mxu3 %v970_v11 }
  0x62   :  { %585 = vmatpush.msra.mxu0 %v1040_v39  ;;  %627 = vmatpush.msra.mxu1 %v970_v11  ;;  %v1379_v11 = vld [vmem:[#allocation13_spill] sm:$0xff] }
  0x63   :  { %686 = vmatpush.msra.mxu2 %v1068_v50  ;;  %737 = vmatpush.msra.mxu3 %v983_v17 }
  0x64   :  { %588 = vmatpush.msra.mxu0 %v1053_v44  ;;  %629 = vmatpush.msra.mxu1 %v983_v17 }
  0x65   :  { %690 = vmatpush.msra.mxu2 %v1084_v56  ;;  %739 = vmatpush.msra.mxu3 %v1005_v25 }
  0x66   :  { %591 = vmatpush.msra.mxu0 %v1071_v51  ;;  %631 = vmatpush.msra.mxu1 %v1005_v25 }
  0x67   :  { %694 = vmatpush.msra.mxu2 %v1100_v62  ;;  %741 = vmatpush.msra.mxu3 %v1025_v32 }
  0x68   :  { %594 = vmatpush.msra.mxu0 %v1087_v57  ;;  %633 = vmatpush.msra.mxu1 %v1025_v32 }
  0x69   :  { %698 = vmatpush.msra.mxu2 %v1116_v7  ;;  %743 = vmatpush.msra.mxu3 %v1055_v45 }
  0x6a   :  { %597 = vmatpush.msra.mxu0 %v1378_v10  ;;  %635 = vmatpush.msra.mxu1 %v1055_v45 }
  0x6b   :  { %702 = vmatpush.msra.mxu2 %v1134_v30  ;;  %745 = vmatpush.msra.mxu3 %v1057_v46 }
  0x6c   :  { %457 = vmatmul.f32.vlgmr.msrb.gmra.mxu2 %v456_v9  ;;  %558 = vmatmul.f32.vlgmr.msrb.gmra.mxu3 %v1299_v14 }
  0x6d   :  { %600 = vmatpush.msra.mxu0 %v1379_v11  ;;  %637 = vmatpush.msra.mxu1 %v1057_v46 }
  0x6e   :  { %706 = vmatpush.msra.mxu2 %v1148_v38  ;;  %747 = vmatpush.msra.mxu3 %v1073_v52 }
  0x6f   :  { %603 = vmatpush.msra.mxu0 %v1137_v31  ;;  %639 = vmatpush.msra.mxu1 %v1073_v52  ;;  %v814_v31 = vld [vmem:[#allocation5] ss:$0 sm:$0xff] }
  0x70   :  { %710 = vmatpush.msra.mxu2 %v1162_v48  ;;  %749 = vmatpush.msra.mxu3 %v1089_v58 }
  0x71   :  { %606 = vmatpush.msra.mxu0 %v1151_v40  ;;  %641 = vmatpush.msra.mxu1 %v1089_v58  ;;  %v815_v40 = vld [vmem:[%s1371_s2] ss:$0 sm:$0xff] }
  0x72   :  { %714 = vmatpush.msra.mxu2 %v1176_v61  ;;  %751 = vmatpush.msra.mxu3 %v1105_v0 }
  0x73   :  { %609 = vmatpush.msra.mxu0 %v1165_v53  ;;  %643 = vmatpush.msra.mxu1 %v1105_v0 }
  0x74   :  { %718 = vmatpush.msra.mxu2 %v1187_v29  ;;  %753 = vmatpush.msra.mxu3 %v1121_v12 }
  0x75   :  { %612 = vmatmul.f32.vlgmr.msra.gmra.mxu0 %v453_v3  ;;  %720 = vmatmul.f32.vlgmr.msra.gmra.mxu2 %v1299_v14 }
  0x76   :  { %645 = vmatpush.msra.mxu1 %v1121_v12  ;;  %755 = vmatpush.msra.mxu3 %v1125_v13 }
  0x77   :  { %757 = vmatmul.f32.vlgmr.msra.gmra.mxu3 %v1299_v14 }
  0x78   :  { %647 = vmatpush.msra.mxu1 %v1125_v13 }
  0x79   :  { %651 = vmatmul.f32.vlgmr.msra.gmra.mxu1 %v454_v4 }
  0xce   :  { %v116_v15 = vpop.f32.mrf.mxu0 }
  0xd2   :  { %v217_v16 = vpop.f32.mrf.mxu1  ;;  %v271_v18 = vpop.f32.mrf.mxu2 }
  0xd3   :  { %v218_v17 = vadd.f32 %v217_v16, %v116_v15 }
  0xd4   :  { %v310_v19 = vpop.f32.mrf.mxu3 }
  0xd5   :  { %v272_v20 = vadd.f32 %v271_v18, %v218_v17 }
  0xd7   :  { %v311_v23 = vadd.f32 %v310_v19, %v272_v20 }
  0xd8   :  { %v379_v22 = vpop.f32.mrf.mxu0 }
  0xd9   :  { %v380_v27 = vadd.f32 %v379_v22, %v311_v23 }
  0xda   :  { %v416_v24 = vpop.f32.mrf.mxu1 }
  0xdb   :  { %v417_v33 = vadd.f32 %v416_v24, %v380_v27 }
  0xdd   :  { %v761_v46 = vmul.f32 0.03125, %v417_v33 }
  0xdf   :  { %v763_v56 = vmul.f32 %v761_v46, %v761_v46  ;;  %v777_v30 = vsub.f32 %v1233_v36, %v761_v46 }
  0xef   :  { %v458_v25 = vpop.f32.mrf.mxu2  ;;  %v559_v26 = vpop.f32.mrf.mxu3 }
  0xf0   :  { %v560_v28 = vadd.f32 %v559_v26, %v458_v25 }
  0xf2   :  { %v613_v32 = vpop.f32.mrf.mxu0 }
  0xf3   :  { %v614_v39 = vadd.f32 %v613_v32, %v560_v28 }
  0xf6   :  { %v652_v41 = vpop.f32.mrf.mxu1 }
  0xf7   :  { %v653_v44 = vadd.f32 %v652_v41, %v614_v39 }
  0xf8   :  { %v721_v45 = vpop.f32.mrf.mxu2 }
  0xf9   :  { %v722_v50 = vadd.f32 %v721_v45, %v653_v44 }
  0xfa   :  { %v758_v51 = vpop.f32.mrf.mxu3 }
  0xfb   :  { %v759_v52 = vadd.f32 %v758_v51, %v722_v50 }
  0xfd   :  { %v762_v57 = vmul.f32 0.03125, %v759_v52 }
  0xff   :  { %v764_v58 = vsub.f32 %v762_v57, %v763_v56 }
 0x101   :  { %v765_v62 = vmax.f32 %v764_v58, 0.0 }
 0x103   :  { %v766_v0 = vadd.f32 1e-05, %v765_v62 }
 0x105   :  { %816 = vrsqrt.f32 %v766_v0  ;;  %vm773_vm1 = vweird.f32 %v766_v0 }
 0x10b   :  { %v817_v2 = vpop.eup %816 }
 0x10c   :  { %v768_v7 = vmul.f32 %v817_v2, %v766_v0  ;;  %vm774_vm0 = vweird.f32 %v817_v2 }
 0x10d   :  { %vm775_vm2 = vmor %vm773_vm1, %vm774_vm0 }
 0x10e   :  { %v769_v8 = vmul.f32 %v817_v2, %v768_v7 }
 0x110   :  { %v770_v12 = vmul.f32 0.5, %v769_v8 }
 0x112   :  { %v771_v13 = vsub.f32 1.5, %v770_v12 }
 0x114   :  { %v772_v21 = vmul.f32 %v817_v2, %v771_v13 }
 0x116   :  { %v776_v34 = vsel %vm775_vm2, %v817_v2, %v772_v21 }
 0x117   :  { %v778_v38 = vmul.f32 %v777_v30, %v776_v34 }
 0x119   :  { %v784_v42 = vmul.f32 %v814_v31, %v778_v38 }
 0x11b   :  { %v788_v48 = vadd.f32 %v815_v40, %v784_v42 }
 0x11d   :  { %789 = vst [vmem:[#allocation8] sm:$0xff] %v788_v48 }
 0x11e   :  { %800 = dma.vmem_to_hbm [thread:$0]  %s796_s6, 128, %s798_s9, [#allocation4]  }
 0x11f   :  { %918 = dma.done.wait [#allocation4], 128  }
 0x120   :  { %919 = vsyncadd [#allocation4], 4294967168 }
 0x121   :  { %805 = vsyncpa [#allocation3], 1 }
 0x122   :  { %806 = vsyncpa [#allocation6], 1 }
 0x123   :  { %807 = vsyncpa [#allocation4], 1 }

</bundles_post_ra>
